<compile_context>
chip_gen: v7x
topology: tpu7x:2x2x1
jax: 0.10.0
libtpu: 0.0.40
codegen_flags: <defaults>
</compile_context>

<pallas_src>
import jax
import jax.numpy as jnp
from jax.experimental import pallas as pl
from jax.experimental.pallas import tpu as pltpu

_BN_EPS = 1e-5
_VMEM_LIMIT_BYTES = 32 * 1024 * 1024       # safe on v5e/v6e (128 MiB) and v7x (64 MiB)
_TARGET_BLOCK_BYTES = 2 << 20              # ~2 MiB per (1, TC, TL) f32 block


def _pick_tiles(c, hw):
    """Pick (TC, TL) tiles for the (channel, H*W) axes.

    TL is a multiple of 128 dividing hw exactly (so the stats reduction never
    sums padded garbage); TC is a multiple of 8 dividing c exactly.  If an
    axis cannot be tiled legally it falls back to the full extent (block dim
    == array dim satisfies the (8,128) rule).  Larger lane tiles are preferred
    (lane-dense, fewer/larger contiguous DMA chunks), then larger channel
    tiles, under a ~2 MiB per-block budget.
    """
    if hw % 128 == 0:
        lane_cands = [t for t in range(128, hw + 1, 128) if hw % t == 0]
    else:
        lane_cands = [hw]
    if c % 8 == 0:
        chan_cands = [t for t in range(8, c + 1, 8) if c % t == 0]
    else:
        chan_cands = [c]

    best = (chan_cands[0], lane_cands[0])      # smallest legal block (fallback)
    best_key = (-1, -1)
    for tl in lane_cands:
        for tc in chan_cands:
            if tc * tl * 4 <= _TARGET_BLOCK_BYTES:
                key = (tl, tc)                 # prefer max lane tile, then max C tile
                if key > best_key:
                    best_key = key
                    best = (tc, tl)
    return best


# ---------------------------------------------------------------------------
# Pass 1: per-(batch, channel) partial sum / sum-of-squares over H*W tiles.
# Output blocks stay resident across the (arbitrary) HW-tile axis.
# ---------------------------------------------------------------------------
def _stats_kernel(x_ref, sum_ref, sq_ref):
    @pl.when(pl.program_id(2) == 0)
    def _():
        sum_ref[...] = jnp.zeros_like(sum_ref)
        sq_ref[...] = jnp.zeros_like(sq_ref)

    x = x_ref[...].astype(jnp.float32)                     # (1, TC, TL)
    sum_ref[...] += jnp.sum(x, axis=2, keepdims=True)      # (1, TC, 1)
    sq_ref[...] += jnp.sum(x * x, axis=2, keepdims=True)   # (1, TC, 1)


# ---------------------------------------------------------------------------
# Pass 2: fused elementwise apply:  out = sigmoid(a[c]*x + b[c]) * x
# ---------------------------------------------------------------------------
def _apply_kernel(x_ref, a_ref, b_ref, o_ref):
    x = x_ref[...].astype(jnp.float32)                     # (1, TC, TL)
    a = a_ref[...]                                         # (1, TC, 1)  f32
    b = b_ref[...]                                         # (1, TC, 1)  f32
    o_ref[...] = (jax.nn.sigmoid(a * x + b) * x).astype(o_ref.dtype)


@jax.jit
def channel_att(x_nchw, gamma, beta):
    """x_nchw: (N, C, H, W); gamma, beta: (C,) BN affine parameters."""
    n, c, h, w = x_nchw.shape
    hw = h * w
    x3 = x_nchw.reshape(n, c, hw)          # free reshape, no data movement
    tc, tl = _pick_tiles(c, hw)
    grid = (n, pl.cdiv(c, tc), pl.cdiv(hw, tl))

    # ---- pass 1: per-channel statistics -----------------------------------
    psum, psq = pl.pallas_call(
        _stats_kernel,
        out_shape=(
            jax.ShapeDtypeStruct((n, c, 1), jnp.float32),
            jax.ShapeDtypeStruct((n, c, 1), jnp.float32),
        ),
        grid=grid,
        in_specs=[pl.BlockSpec((1, tc, tl), lambda i, ci, j: (i, ci, j))],
        out_specs=(
            pl.BlockSpec((1, tc, 1), lambda i, ci, j: (i, ci, 0)),
            pl.BlockSpec((1, tc, 1), lambda i, ci, j: (i, ci, 0)),
        ),
        compiler_params=pltpu.CompilerParams(
            dimension_semantics=("parallel", "parallel", "arbitrary"),
            vmem_limit_bytes=_VMEM_LIMIT_BYTES,
        ),
    )(x3)

    # ---- tiny (C,)-sized epilogue: finish reduction, fold constants --------
    #   xbn = (x - mean) * inv_std * gamma + beta
    #   wbn = |gamma| / sum(|gamma|)
    #   out = sigmoid(wbn * xbn) * x = sigmoid(a*x + b) * x
    m_total = jnp.float32(n * hw)
    s = jnp.sum(psum[..., 0], axis=0)                      # (C,)
    ss = jnp.sum(psq[..., 0], axis=0)                      # (C,)
    mean = s / m_total
    var = jnp.maximum(ss / m_total - mean * mean, 0.0)     # f32 accumulation
    inv_std = jax.lax.rsqrt(var + _BN_EPS)

    g = gamma.astype(jnp.float32)
    b_ = beta.astype(jnp.float32)
    abs_g = jnp.abs(g)
    wbn = abs_g / jnp.sum(abs_g)
    a_vec = (wbn * g * inv_std).reshape(1, c, 1)
    b_vec = (wbn * (b_ - mean * g * inv_std)).reshape(1, c, 1)

    # ---- pass 2: streaming elementwise apply -------------------------------
    out3 = pl.pallas_call(
        _apply_kernel,
        out_shape=jax.ShapeDtypeStruct((n, c, hw), x_nchw.dtype),
        grid=grid,
        in_specs=[
            pl.BlockSpec((1, tc, tl), lambda i, ci, j: (i, ci, j)),
            pl.BlockSpec((1, tc, 1), lambda i, ci, j: (0, ci, 0)),
            pl.BlockSpec((1, tc, 1), lambda i, ci, j: (0, ci, 0)),
        ],
        out_specs=pl.BlockSpec((1, tc, tl), lambda i, ci, j: (i, ci, j)),
        compiler_params=pltpu.CompilerParams(
            dimension_semantics=("parallel", "parallel", "parallel"),
            vmem_limit_bytes=_VMEM_LIMIT_BYTES,
        ),
    )(x3, a_vec, b_vec)

    return out3.reshape(n, c, h, w)


def _reference(x_nchw, gamma, beta):
    # Pure-JAX reference of the same forward pass (silent sanity check).
    mean = jnp.mean(x_nchw, axis=(0, 2, 3), keepdims=True)
    var = jnp.mean((x_nchw - mean) ** 2, axis=(0, 2, 3), keepdims=True)
    g = gamma.reshape(1, -1, 1, 1)
    b = beta.reshape(1, -1, 1, 1)
    xbn = (x_nchw - mean) * jax.lax.rsqrt(var + _BN_EPS) * g + b
    wbn = jnp.abs(g) / jnp.sum(jnp.abs(gamma))
    return jax.nn.sigmoid(wbn * xbn) * x_nchw


if __name__ == "__main__":
    key = jax.random.PRNGKey(0)
    kx, kg, kb = jax.random.split(key, 3)

    N, C, H, W = 2, 4, 16, 16
    x = jax.random.normal(kx, (N, C, H, W), dtype=jnp.float32)
    # Deterministic synthetic BN parameters (BatchNorm2d(channels, affine=True)).
    gamma = jax.random.normal(kg, (C,), dtype=jnp.float32) * 0.5 + 1.0
    beta = jax.random.normal(kb, (C,), dtype=jnp.float32) * 0.1

    out = jax.block_until_ready(channel_att(x, gamma, beta))

    ref = _reference(x, gamma, beta)
    assert out.shape == (N, C, H, W)
    assert jnp.allclose(out, ref, atol=1e-4, rtol=1e-4), float(
        jnp.max(jnp.abs(out - ref))
    )

    print("KERNEL_OK")
</pallas_src>

<mosaic_0001>
module attributes {stable_mosaic.version = 11 : i64} {
  func.func @_stats_kernel(%arg0: i32, %arg1: i32, %arg2: i32, %arg3: memref<1x4x256xf32, #tpu.memory_space<vmem>>, %arg4: memref<1x4x1xf32, #tpu.memory_space<vmem>>, %arg5: memref<1x4x1xf32, #tpu.memory_space<vmem>>) attributes {dimension_semantics = [#tpu.dimension_semantics<parallel>, #tpu.dimension_semantics<parallel>, #tpu.dimension_semantics<arbitrary>], iteration_bounds = array<i64: 2, 1, 1>, scalar_prefetch = 0 : i64, scratch_operands = 0 : i64, tpu.core_type = #tpu.core_type<tc>, window_params = [{transform_indices = @transform_0, window_bounds = array<i64: 1, 4, 256>}, {transform_indices = @transform_1, window_bounds = array<i64: 1, 4, 1>}, {transform_indices = @transform_2, window_bounds = array<i64: 1, 4, 1>}]} {
    %c0_i32 = arith.constant 0 : i32
    %0 = arith.cmpi eq, %arg2, %c0_i32 : i32
    %1 = arith.extui %0 : i1 to i32
    %c0_i32_0 = arith.constant 0 : i32
    %2 = arith.cmpi ne, %1, %c0_i32_0 : i32
    scf.if %2 {
      %cst_16 = arith.constant 0.000000e+00 : f32
      %15 = vector.broadcast %cst_16 : f32 to vector<1x4x1xf32>
      %c0_17 = arith.constant 0 : index
      %c0_18 = arith.constant 0 : index
      %c0_19 = arith.constant 0 : index
      %16 = vector.load %arg4[%c0_17, %c0_18, %c0_19] : memref<1x4x1xf32, #tpu.memory_space<vmem>>, vector<1x4x1xf32>
      tpu.vector_store %arg4[%c0_17, %c0_18, %c0_19], %15 {strides = array<i32>} : memref<1x4x1xf32, #tpu.memory_space<vmem>>, vector<1x4x1xf32>,
      %cst_20 = arith.constant 0.000000e+00 : f32
      %17 = vector.broadcast %cst_20 : f32 to vector<1x4x1xf32>
      %c0_21 = arith.constant 0 : index
      %c0_22 = arith.constant 0 : index
      %c0_23 = arith.constant 0 : index
      %18 = vector.load %arg5[%c0_21, %c0_22, %c0_23] : memref<1x4x1xf32, #tpu.memory_space<vmem>>, vector<1x4x1xf32>
      tpu.vector_store %arg5[%c0_21, %c0_22, %c0_23], %17 {strides = array<i32>} : memref<1x4x1xf32, #tpu.memory_space<vmem>>, vector<1x4x1xf32>,
    } else {
    }
    %c0 = arith.constant 0 : index
    %c0_1 = arith.constant 0 : index
    %c0_2 = arith.constant 0 : index
    %3 = vector.load %arg3[%c0, %c0_1, %c0_2] : memref<1x4x256xf32, #tpu.memory_space<vmem>>, vector<1x4x256xf32>
    %c0_3 = arith.constant 0 : index
    %c0_4 = arith.constant 0 : index
    %c0_5 = arith.constant 0 : index
    %4 = vector.load %arg4[%c0_3, %c0_4, %c0_5] : memref<1x4x1xf32, #tpu.memory_space<vmem>>, vector<1x4x1xf32>
    %cst = arith.constant dense<0.000000e+00> : vector<1x4xf32>
    %5 = vector.multi_reduction <add>, %3, %cst [2] : vector<1x4x256xf32> to vector<1x4xf32>
    %6 = vector.shape_cast %5 : vector<1x4xf32> to vector<1x4x1xf32>
    %7 = arith.addf %4, %6 : vector<1x4x1xf32>
    %c0_6 = arith.constant 0 : index
    %c0_7 = arith.constant 0 : index
    %c0_8 = arith.constant 0 : index
    %8 = vector.load %arg4[%c0_6, %c0_7, %c0_8] : memref<1x4x1xf32, #tpu.memory_space<vmem>>, vector<1x4x1xf32>
    tpu.vector_store %arg4[%c0_6, %c0_7, %c0_8], %7 {strides = array<i32>} : memref<1x4x1xf32, #tpu.memory_space<vmem>>, vector<1x4x1xf32>,
    %c0_9 = arith.constant 0 : index
    %c0_10 = arith.constant 0 : index
    %c0_11 = arith.constant 0 : index
    %9 = vector.load %arg5[%c0_9, %c0_10, %c0_11] : memref<1x4x1xf32, #tpu.memory_space<vmem>>, vector<1x4x1xf32>
    %10 = arith.mulf %3, %3 : vector<1x4x256xf32>
    %cst_12 = arith.constant dense<0.000000e+00> : vector<1x4xf32>
    %11 = vector.multi_reduction <add>, %10, %cst_12 [2] : vector<1x4x256xf32> to vector<1x4xf32>
    %12 = vector.shape_cast %11 : vector<1x4xf32> to vector<1x4x1xf32>
    %13 = arith.addf %9, %12 : vector<1x4x1xf32>
    %c0_13 = arith.constant 0 : index
    %c0_14 = arith.constant 0 : index
    %c0_15 = arith.constant 0 : index
    %14 = vector.load %arg5[%c0_13, %c0_14, %c0_15] : memref<1x4x1xf32, #tpu.memory_space<vmem>>, vector<1x4x1xf32>
    tpu.vector_store %arg5[%c0_13, %c0_14, %c0_15], %13 {strides = array<i32>} : memref<1x4x1xf32, #tpu.memory_space<vmem>>, vector<1x4x1xf32>,
    return
  }
  func.func @transform_0(%arg0: i32, %arg1: i32, %arg2: i32) -> (i32, i32, i32) {
    %c0_i32 = arith.constant 0 : i32
    return %arg0, %arg1, %arg2 : i32, i32, i32
  }
  func.func @transform_1(%arg0: i32, %arg1: i32, %arg2: i32) -> (i32, i32, i32) {
    %c0_i32 = arith.constant 0 : i32
    %c0_i32_0 = arith.constant 0 : i32
    return %arg0, %arg1, %c0_i32 : i32, i32, i32
  }
  func.func @transform_2(%arg0: i32, %arg1: i32, %arg2: i32) -> (i32, i32, i32) {
    %c0_i32 = arith.constant 0 : i32
    %c0_i32_0 = arith.constant 0 : i32
    return %arg0, %arg1, %c0_i32 : i32, i32, i32
  }
}

module attributes {stable_mosaic.version = 11 : i64} {
  func.func @_apply_kernel(%arg0: i32, %arg1: i32, %arg2: i32, %arg3: memref<1x4x256xf32, #tpu.memory_space<vmem>>, %arg4: memref<1x4x1xf32, #tpu.memory_space<vmem>>, %arg5: memref<1x4x1xf32, #tpu.memory_space<vmem>>, %arg6: memref<1x4x256xf32, #tpu.memory_space<vmem>>) attributes {dimension_semantics = [#tpu.dimension_semantics<parallel>, #tpu.dimension_semantics<parallel>, #tpu.dimension_semantics<parallel>], iteration_bounds = array<i64: 2, 1, 1>, scalar_prefetch = 0 : i64, scratch_operands = 0 : i64, tpu.core_type = #tpu.core_type<tc>, window_params = [{transform_indices = @transform_0, window_bounds = array<i64: 1, 4, 256>}, {transform_indices = @transform_1, window_bounds = array<i64: 1, 4, 1>}, {transform_indices = @transform_2, window_bounds = array<i64: 1, 4, 1>}, {transform_indices = @transform_3, window_bounds = array<i64: 1, 4, 256>}]} {
    %c0 = arith.constant 0 : index
    %c0_0 = arith.constant 0 : index
    %c0_1 = arith.constant 0 : index
    %0 = vector.load %arg3[%c0, %c0_0, %c0_1] : memref<1x4x256xf32, #tpu.memory_space<vmem>>, vector<1x4x256xf32>
    %c0_2 = arith.constant 0 : index
    %c0_3 = arith.constant 0 : index
    %c0_4 = arith.constant 0 : index
    %1 = vector.load %arg4[%c0_2, %c0_3, %c0_4] : memref<1x4x1xf32, #tpu.memory_space<vmem>>, vector<1x4x1xf32>
    %c0_5 = arith.constant 0 : index
    %c0_6 = arith.constant 0 : index
    %c0_7 = arith.constant 0 : index
    %2 = vector.load %arg5[%c0_5, %c0_6, %c0_7] : memref<1x4x1xf32, #tpu.memory_space<vmem>>, vector<1x4x1xf32>
    %3 = vector.broadcast %1 : vector<1x4x1xf32> to vector<1x4x256xf32>
    %4 = arith.mulf %3, %0 : vector<1x4x256xf32>
    %5 = vector.broadcast %2 : vector<1x4x1xf32> to vector<1x4x256xf32>
    %6 = arith.addf %4, %5 : vector<1x4x256xf32>
    %7 = arith.negf %6 : vector<1x4x256xf32>
    %8 = math.exp %7 : vector<1x4x256xf32>
    %cst = arith.constant 1.000000e+00 : f32
    %9 = vector.broadcast %cst : f32 to vector<1x4x256xf32>
    %10 = arith.addf %9, %8 : vector<1x4x256xf32>
    %11 = arith.divf %9, %10 : vector<1x4x256xf32>
    %12 = arith.mulf %11, %0 : vector<1x4x256xf32>
    %c0_8 = arith.constant 0 : index
    %c0_9 = arith.constant 0 : index
    %c0_10 = arith.constant 0 : index
    %13 = vector.load %arg6[%c0_8, %c0_9, %c0_10] : memref<1x4x256xf32, #tpu.memory_space<vmem>>, vector<1x4x256xf32>
    tpu.vector_store %arg6[%c0_8, %c0_9, %c0_10], %12 {strides = array<i32>} : memref<1x4x256xf32, #tpu.memory_space<vmem>>, vector<1x4x256xf32>,
    return
  }
  func.func @transform_0(%arg0: i32, %arg1: i32, %arg2: i32) -> (i32, i32, i32) {
    %c0_i32 = arith.constant 0 : i32
    return %arg0, %arg1, %arg2 : i32, i32, i32
  }
  func.func @transform_1(%arg0: i32, %arg1: i32, %arg2: i32) -> (i32, i32, i32) {
    %c0_i32 = arith.constant 0 : i32
    %c0_i32_0 = arith.constant 0 : i32
    %c0_i32_1 = arith.constant 0 : i32
    return %c0_i32, %arg1, %c0_i32_0 : i32, i32, i32
  }
  func.func @transform_2(%arg0: i32, %arg1: i32, %arg2: i32) -> (i32, i32, i32) {
    %c0_i32 = arith.constant 0 : i32
    %c0_i32_0 = arith.constant 0 : i32
    %c0_i32_1 = arith.constant 0 : i32
    return %c0_i32, %arg1, %c0_i32_0 : i32, i32, i32
  }
  func.func @transform_3(%arg0: i32, %arg1: i32, %arg2: i32) -> (i32, i32, i32) {
    %c0_i32 = arith.constant 0 : i32
    return %arg0, %arg1, %arg2 : i32, i32, i32
  }
}

</mosaic_0001>

<bundles_post_ra>
// kernel: channel_att.2
= control target key start
LH: loop header
LB: loop body
LE: loop exit
PB: predicated region body
PF: predicated region fallthrough
CT: control target
= control target key end

     0   :  { %s456_s9 = smov 0   ;;  %s458_s10 = smov 0   ;;  %s496_s0 = inlined_call_operand.vmem [shape: f32[2,4,256], index: 0, kind: input, shape index: {}]   ;;  %s497_s1 = inlined_call_operand.vmem [shape: f32[2,4,1], index: 1, kind: output, shape index: {0}]   ;;  %s498_s2 = inlined_call_operand.vmem [shape: f32[2,4,1], index: 2, kind: output, shape index: {1}]  }
   0x1   :  { %s460_s11 = smov 0  }
   0x2 LB: > { %s32_s12 = sadd.s32 1, %s434_s10  ;;  %p382_p0 = scmp.ge.s32.totalorder %s438_s11, 1  ;;  %s438_s11 = sphi %s460_s11, %s13_s11   ;;  %s434_s10 = sphi %s458_s10, %s500_s10   ;;  %s430_s9 = sphi %s456_s9, %s499_s9  }
   0x3   : > { %p34_p1 = scmp.ge.s32.totalorder %s32_s12, 2  ;;  %p151_p2 = scmp.lt.s32.totalorder %s438_s11, 3 }
   0x5   : > { %s502_s12 = smov (%p34_p1, %s32_s12), 0  ;;  %p152_p3 = pnand %p382_p0, %p151_p2 }
   0x6   : > { %p191_p4 = scmp.lt.s32.totalorder (!%p152_p3), %s430_s9, 1  ;;  %vm222_vm0 = vcmask (!%p152_p3), 3072   ;;  %vm230_vm1 = vcmask (!%p152_p3), 1043456   ;;  %v440_v1 = vmov (!%p152_p3), 0.0  }
   0x7   : > { %155 = sbr.rel (%p152_p3) target bundleno = 172 (0xac), region = 24 }
   0xe   : > { %s504_s9 = smov (!%p191_p4, %s430_s9), 1 }
   0xf   : > { %s389_s13 = sshll.u32 %s504_s9, 3  ;;  %s385_s14 = sshll.u32 %s504_s9, 2 }
  0x10   : > { %s202_s17 = scalar_lea.vmem %s496_s0, %s389_s13  ;;  %s210_s20 = scalar_lea.vmem %s497_s1, %s385_s14 }
  0x11   : > { %v225_v0 = vld [vmem:[%s202_s17] sm:$0xff]  ;;  %223 = vst.msk [vmem:[%s210_s20] sm:$0xf] %vm222_vm0, %v440_v1  ;;  %s217_s23 = scalar_lea.vmem %s498_s2, %s385_s14 }
  0x12   : > { %v228_v2 = vcombine.high %v225_v0, %v225_v0  ;;  %v231_v3 = vsel %vm230_vm1, %v225_v0, 0.0  ;;  %v240_v4 = vmul.f32 %v225_v0, %v225_v0  ;;  %224 = vst.msk [vmem:[%s217_s23] sm:$0xf] %vm222_vm0, %v440_v1 }
  0x14   : > { %v232_v5 = vsel %vm230_vm1, %v228_v2, 0.0  ;;  %v242_v6 = vcombine.high %v240_v4, %v240_v4  ;;  %v244_v7 = vsel %vm230_vm1, %v240_v4, 0.0 }
  0x15   : > { %v233_v8 = vadd.f32 %v232_v5, %v231_v3 }
  0x16   : > { %v245_v9 = vsel %vm230_vm1, %v242_v6, 0.0 }
  0x17   : > { %234 = vadd.xlane.f32.xlu0 %v233_v8  ;;  %v246_v10 = vadd.f32 %v245_v9, %v244_v7 }
  0x18   : > { %v226_v11 = vld [vmem:[%s210_s20] sm:$0xf] }
  0x19   : > { %v239_v14 = vld [vmem:[%s217_s23] sm:$0xf] }
  0x1b   : > { %247 = vadd.xlane.f32.xlu0 %v246_v10 }
  0xa4   : > { %v235_v12 = vpop.xlane.xlu0 %234 }
  0xa5   : > { %v236_v13 = vadd.f32 %v235_v12, %v226_v11 }
  0xa7   : > { %238 = vst.msk [vmem:[%s210_s20] sm:$0xf] %vm222_vm0, %v236_v13 }
  0xa8   : > { %v248_v15 = vpop.xlane.xlu0 %247 }
  0xa9   : > { %v249_v16 = vadd.f32 %v248_v15, %v239_v14 }
  0xab   : > { %250 = vst.msk [vmem:[%s217_s23] sm:$0xf] %vm222_vm0, %v249_v16 }
  0xac PF: > { %s13_s11 = sadd.s32 1, %s438_s11   ;;  %s499_s9 = smov %s434_s10 }
  0xad   : > { %p10_p5 = scmp.ge.s32.totalorder %s13_s11, 4   ;;  %s500_s10 = smov %s502_s12 }
  0xaf   :  { %12 = sbr.rel (!%p10_p5) target bundleno = 2 (0x2), region = 70 }

// kernel: channel_att.3
= control target key start
LH: loop header
LB: loop body
LE: loop exit
PB: predicated region body
PF: predicated region fallthrough
CT: control target
= control target key end

     0   :  { %s553_s12 = smov 0   ;;  %s555_s13 = smov 0   ;;  %s592_s0 = inlined_call_operand.vmem [shape: f32[2,4,256], index: 0, kind: input, shape index: {}]   ;;  %s593_s1 = inlined_call_operand.vmem [shape: f32[1,4,1], index: 1, kind: input, shape index: {}]   ;;  %s594_s2 = inlined_call_operand.vmem [shape: f32[1,4,1], index: 2, kind: input, shape index: {}]   ;;  %s595_s3 = inlined_call_operand.vmem [shape: f32[2,4,256], index: 3, kind: output, shape index: {}]  }
   0x1   :  { %s557_s14 = smov 0  }
   0x2 LB: > { %s32_s15 = sadd.s32 1, %s526_s13  ;;  %p462_p0 = scmp.ge.s32.totalorder %s530_s14, 1  ;;  %s530_s14 = sphi %s557_s14, %s13_s14   ;;  %s526_s13 = sphi %s555_s13, %s597_s13   ;;  %s522_s12 = sphi %s553_s12, %s596_s12  }
   0x3   : > { %p34_p1 = scmp.ge.s32.totalorder %s32_s15, 2  ;;  %p191_p2 = scmp.lt.s32.totalorder %s530_s14, 3 }
   0x5   : > { %s599_s15 = smov (%p34_p1, %s32_s15), 0  ;;  %p192_p3 = pnand %p462_p0, %p191_p2 }
   0x6   : > { %v276_v0 = vld [vmem:[%s593_s1] sm:$0xf] (!%p192_p3)  ;;  %v532_v1 = vmov (!%p192_p3), 0   ;;  %p240_p4 = scmp.lt.s32.totalorder (!%p192_p3), %s522_s12, 1 }
   0x7   : > { %195 = sbr.rel (%p192_p3) target bundleno = 174 (0xae), region = 32  ;;  %498 = vset.pattern.permute.xlu0 (!%p192_p3), %v532_v1  ;;  %v277_v2 = vld [vmem:[%s594_s2] sm:$0xf] (!%p192_p3) }
   0x8   : > { %280 = vperm.xlu0 (!%p192_p3), %498, %v276_v0  }
   0xc   : > { %290 = vperm.xlu0 (!%p192_p3), %498, %v277_v2  }
   0xe   : > { %s601_s12 = smov (!%p240_p4, %s522_s12), 1 }
   0xf   : > { %s471_s20 = sshll.u32 %s601_s12, 3 }
  0x10   : > { %s251_s23 = scalar_lea.vmem %s592_s0, %s471_s20  ;;  %s273_s26 = scalar_lea.vmem %s595_s3, %s471_s20 }
  0x11   : > { %v275_v3 = vld [vmem:[%s251_s23] sm:$0xff] }
  0x12   : > { %v284_v4 = vcombine.high %v275_v3, %v275_v3 }
  0x87   : > { %v281_v5 = vpop.permute.xlu0 %280 }
  0x88   : > { %v286_v6 = vmul.f32 %v281_v5, %v275_v3  ;;  %v287_v7 = vmul.f32 %v284_v4, %v281_v5 }
  0x8b   : > { %v291_v8 = vpop.permute.xlu0 %290 }
  0x8c   : > { %v293_v9 = vadd.f32 %v291_v8, %v286_v6  ;;  %v294_v10 = vadd.f32 %v291_v8, %v287_v7 }
  0x8e   : > { %v467_v11 = vmul.f32 -1.442695, %v293_v9  ;;  %v468_v12 = vmul.f32 -1.442695, %v294_v10 }
  0x90   : > { %500 = vpow2.f32 %v467_v11 }
  0x91   : > { %502 = vpow2.f32 %v468_v12 }
  0x9a   : > { %v501_v13 = vpop.eup %500 }
  0x9b   : > { %v503_v14 = vpop.eup %502  ;;  %v301_v15 = vadd.f32 1.0, %v501_v13 }
  0x9c   : > { %v302_v16 = vadd.f32 1.0, %v503_v14 }
  0x9d   : > { %504 = vrcp.f32 %v301_v15 }
  0x9e   : > { %506 = vrcp.f32 %v302_v16 }
  0xa7   : > { %v505_v17 = vpop.eup %504 }
  0xa8   : > { %v507_v18 = vpop.eup %506  ;;  %v307_v19 = vmul.f32 %v505_v17, %v275_v3 }
  0xa9   : > { %v308_v20 = vmul.f32 %v507_v18, %v284_v4 }
  0xab   : > { %v311_v21 = vcombine.low %v307_v19, %v308_v20 }
  0xad   : > { %313 = vst [vmem:[%s273_s26] sm:$0xff] %v311_v21 }
  0xae PF: > { %s13_s14 = sadd.s32 1, %s530_s14   ;;  %s596_s12 = smov %s526_s13 }
  0xaf   : > { %p10_p5 = scmp.ge.s32.totalorder %s13_s14, 4   ;;  %s597_s13 = smov %s599_s15 }
  0xb1   :  { %12 = sbr.rel (!%p10_p5) target bundleno = 2 (0x2), region = 68 }

</bundles_post_ra>
